<compile_context>
chip_gen: v6e
topology: v6e:2x2x1
jax: 0.10.0
libtpu: 0.0.40
codegen_flags: <defaults>
</compile_context>

<pallas_src>
import functools
import math

import jax
import jax.numpy as jnp
import numpy as np
from jax.experimental import pallas as pl
from jax.experimental.pallas import tpu as pltpu


# ----------------------------------------------------------------------------
# Host-side construction of the composed transform matrix.
# ----------------------------------------------------------------------------
def _crop_col_indices(W, owidth):
    """Column (frequency) indices kept by _spectral_crop along width."""
    cw = math.ceil(owidth / 2)
    left = list(range(cw))
    if owidth % 2 == 1:
        right = list(range(W - (cw - 1), W))
    else:
        right = list(range(W - cw, W))
    return np.array(left + right, dtype=np.int64)


def _make_composed_matrix(H, W, T):
    """Precompose DHT2_{H,W} -> width crop -> DHT2_{H,T} into one (H*W, H*T) map.

    Using cas(a+b) = cos(a)(cos(b)+sin(b)) + sin(a)(cos(b)-sin(b)), each 2-D DHT
    is  Hcos @ X @ (Wcos+Wsin)^T + Hsin @ X @ (Wcos-Wsin)^T.  The height crop at
    oheight == H is the identity; the width crop is folded into the first width
    transform by selecting the kept frequency rows.  Built in float64.
    """
    k = np.arange(H)[:, None]
    m = np.arange(H)[None, :]
    th_h = 2.0 * np.pi * k * m / H
    hc = np.cos(th_h)
    hs = np.sin(th_h)

    # First DHT width transform with the spectral crop and 1/sqrt(H*W) folded in.
    sel = _crop_col_indices(W, T)
    n = np.arange(W)[None, :]
    th_w = 2.0 * np.pi * sel[:, None] * n / W            # (T, W)
    s1 = 1.0 / math.sqrt(H * W)
    wp = ((np.cos(th_w) + np.sin(th_w)) * s1).T          # (W, T)
    wm = ((np.cos(th_w) - np.sin(th_w)) * s1).T          # (W, T)

    # Second DHT width transform over cropped width T, 1/sqrt(H*T) folded in.
    q = np.arange(T)[:, None]
    l = np.arange(T)[None, :]
    th_t = 2.0 * np.pi * q * l / T
    s2 = 1.0 / math.sqrt(H * T)
    tp = ((np.cos(th_t) + np.sin(th_t)) * s2).T          # (T, T)
    tm = ((np.cos(th_t) - np.sin(th_t)) * s2).T          # (T, T)

    # out = hc @ (hc X wp + hs X wm) @ tp + hs @ (hc X wp + hs X wm) @ tm
    terms = [(hc @ hc, wp @ tp), (hc @ hs, wm @ tp),
             (hs @ hc, wp @ tm), (hs @ hs, wm @ tm)]
    M = np.zeros((H * W, H * T), dtype=np.float64)
    for A, Bmat in terms:
        # out[i, j] += sum_{m,n} A[i, m] * x[m, n] * Bmat[n, j]
        # row index m*W + n (row-major flatten of x), col index i*T + j.
        M += np.einsum("im,nj->mnij", A, Bmat).reshape(H * W, H * T)
    return jnp.asarray(M.astype(np.float32))


# ----------------------------------------------------------------------------
# Pallas kernel: one batch tile of flattened images -> pooled outputs.
# ----------------------------------------------------------------------------
def _spectral_pool_matmul_kernel(x_ref, m_ref, o_ref, *, compute_dtype):
    # Cast the f32 HBM rows to the compute dtype in-register (free under a
    # memory-bound regime); f32 accumulation on the MXU.
    x = x_ref[...].astype(compute_dtype)
    o_ref[...] = jnp.dot(
        x, m_ref[...], preferred_element_type=jnp.float32
    ).astype(o_ref.dtype)


def _round_up(x, m):
    return (x + m - 1) // m * m


def _sublane(dtype):
    # Sublane multiple required for a given HBM dtype (8 for 32-bit, 16 bf16).
    return max(8, 32 // jnp.dtype(dtype).itemsize)


@functools.partial(
    jax.jit,
    static_argnames=("t_size", "block_b", "compute_dtype", "out_dtype",
                     "min_pallas_batch"))
def spectral_pool2d(x, t_size, block_b=2048, compute_dtype=jnp.bfloat16,
                    out_dtype=jnp.float32, min_pallas_batch=256):
    """x: (N, C, H, W) float32  ->  (N, C, H, t_size) out_dtype."""
    N, C, H, W = x.shape
    T = t_size
    HW, HT = H * W, H * T
    B = N * C

    M = _make_composed_matrix(H, W, T).astype(compute_dtype)

    # (N, C, H, W) -> (B, H*W): pure view for contiguous input, no extra HBM pass.
    xf = x.reshape(B, HW)

    if B < min_pallas_batch:
        # Small-batch fallback: a single tiny grid step would be dominated by
        # fixed per-step pipeline + launch overhead; a plain matmul lets XLA
        # fuse with neighbouring ops instead.
        out = jnp.dot(xf.astype(compute_dtype), M,
                      preferred_element_type=jnp.float32).astype(out_dtype)
        return out.reshape(N, C, H, T)

    # Batch tile: as large as block_b allows, but split so the grid has at
    # least 2 steps (megacore sharding on v7x).  Only the HBM dtypes (input /
    # output) constrain the sublane alignment; the compute dtype lives in vregs.
    sublane = max(_sublane(x.dtype), _sublane(out_dtype))
    TB = min(block_b, max(sublane, _round_up(pl.cdiv(B, 2), sublane)))
    grid_b = pl.cdiv(B, TB)   # partial last block is masked; rows independent.

    in_bytes = jnp.dtype(x.dtype).itemsize
    out_bytes = jnp.dtype(out_dtype).itemsize
    m_bytes = jnp.dtype(compute_dtype).itemsize
    cost = pl.CostEstimate(
        flops=2 * B * HW * HT,
        transcendentals=0,
        bytes_accessed=B * (HW * in_bytes + HT * out_bytes) + HW * HT * m_bytes,
    )

    kernel = functools.partial(_spectral_pool_matmul_kernel,
                               compute_dtype=compute_dtype)

    out = pl.pallas_call(
        kernel,
        out_shape=jax.ShapeDtypeStruct((B, HT), out_dtype),
        grid=(grid_b,),
        in_specs=[
            pl.BlockSpec((TB, HW), lambda b: (b, 0)),   # batch tile of images
            pl.BlockSpec((HW, HT), lambda b: (0, 0)),   # grid-invariant matrix
        ],
        out_specs=pl.BlockSpec((TB, HT), lambda b: (b, 0)),  # lane-dense output
        compiler_params=pltpu.CompilerParams(
            dimension_semantics=("parallel",),          # megacore-shard batch
            vmem_limit_bytes=32 * 1024 * 1024,          # safe on v5e/v6e/v7x
        ),
        cost_estimate=cost,
    )(xf, M)

    return out.reshape(N, C, H, T)


# ----------------------------------------------------------------------------
# Pure-JAX reference (mirrors the PyTorch code path) for validation.
# ----------------------------------------------------------------------------
def _dht_ref(x):
    f = jnp.fft.fft2(x, norm="ortho")   # over last two axes, 1/sqrt(H*W)
    return f.real - f.imag


def _spectral_crop_ref(x, oheight, owidth):
    ch = math.ceil(oheight / 2)
    cw = math.ceil(owidth / 2)
    rh = (cw - 1) if owidth % 2 == 1 else cw
    rb = (ch - 1) if oheight % 2 == 1 else ch
    tl = x[:, :, :ch, :cw]
    tr = x[:, :, :ch, x.shape[-1] - rh:]
    bl = x[:, :, x.shape[-2] - rb:, :cw]
    br = x[:, :, x.shape[-2] - rb:, x.shape[-1] - rh:]
    top = jnp.concatenate([tl, tr], axis=-1)
    bot = jnp.concatenate([bl, br], axis=-1)
    return jnp.concatenate([top, bot], axis=-2)


def spectral_pool2d_ref(x, t_size):
    H, W = x.shape[-2], x.shape[-1]
    dht = _dht_ref(x)
    cropped = _spectral_crop_ref(dht, H, t_size)
    return _dht_ref(cropped)


if __name__ == "__main__":
    key = jax.random.PRNGKey(0)
    t_size = 8

    # --- Primary (module-sized) case: (2, 4, 16, 16) -> (2, 4, 16, 8) ----------
    N, C, H, W = 2, 4, 16, 16
    x = jax.random.normal(key, (N, C, H, W), dtype=jnp.float32)
    ref = spectral_pool2d_ref(x, t_size)

    # 1) Forced-Pallas f32 path: tight check that the precomposed matrix equals
    #    DHT -> crop -> DHT exactly.
    out_f32 = jax.block_until_ready(
        spectral_pool2d(x, t_size, compute_dtype=jnp.float32,
                        min_pallas_batch=0))
    assert out_f32.shape == (N, C, H, t_size), out_f32.shape
    np.testing.assert_allclose(np.asarray(out_f32), np.asarray(ref),
                               rtol=1e-4, atol=1e-4)

    # 2) Forced-Pallas bf16-compute path (in-kernel cast, f32 accumulation).
    out_bf16 = jax.block_until_ready(
        spectral_pool2d(x, t_size, min_pallas_batch=0))
    assert out_bf16.shape == (N, C, H, t_size), out_bf16.shape
    np.testing.assert_allclose(np.asarray(out_bf16), np.asarray(ref),
                               rtol=5e-2, atol=5e-2)

    # 3) Auto path at this tiny batch uses the fused-matmul fallback.
    out_auto = jax.block_until_ready(spectral_pool2d(x, t_size))
    np.testing.assert_allclose(np.asarray(out_auto), np.asarray(ref),
                               rtol=5e-2, atol=5e-2)

    # --- Medium-batch case: exercises >=2 grid steps and the masked partial
    #     last block (no pad / no output slice) on the Pallas path. -------------
    key2 = jax.random.PRNGKey(0)
    N2, C2 = 8, 65                      # B = 520 rows
    x2 = jax.random.normal(key2, (N2, C2, H, W), dtype=jnp.float32)
    ref2 = spectral_pool2d_ref(x2, t_size)
    out2 = jax.block_until_ready(spectral_pool2d(x2, t_size))
    assert out2.shape == (N2, C2, H, t_size), out2.shape
    np.testing.assert_allclose(np.asarray(out2), np.asarray(ref2),
                               rtol=5e-2, atol=5e-2)

    print("KERNEL_OK")
</pallas_src>

<mosaic_0001>
module attributes {stable_mosaic.version = 11 : i64} {
  func.func @_spectral_pool_matmul_kernel(%arg0: i32, %arg1: memref<8x256xf32, #tpu.memory_space<vmem>>, %arg2: memref<256x128xf32, #tpu.memory_space<vmem>>, %arg3: memref<8x128xf32, #tpu.memory_space<vmem>>) attributes {dimension_semantics = [#tpu.dimension_semantics<parallel>], iteration_bounds = array<i64: 1>, scalar_prefetch = 0 : i64, scratch_operands = 0 : i64, tpu.core_type = #tpu.core_type<tc>, window_params = [{transform_indices = @transform_0, window_bounds = array<i64: 8, 256>}, {pipeline_mode = #tpu.pipeline_mode<synchronous>, transform_indices = @transform_1, window_bounds = array<i64: 256, 128>}, {transform_indices = @transform_2, window_bounds = array<i64: 8, 128>}]} {
    %c0 = arith.constant 0 : index
    %c0_0 = arith.constant 0 : index
    %0 = vector.load %arg1[%c0, %c0_0] : memref<8x256xf32, #tpu.memory_space<vmem>>, vector<8x256xf32>
    %c0_1 = arith.constant 0 : index
    %c0_2 = arith.constant 0 : index
    %1 = vector.load %arg2[%c0_1, %c0_2] : memref<256x128xf32, #tpu.memory_space<vmem>>, vector<256x128xf32>
    %cst = arith.constant dense<0.000000e+00> : vector<8x128xf32>
    %2 = tpu.matmul %0, %1, %cst {dimension_numbers = #tpu.dot_dimension_numbers<[1], [0], [0], [1], [0, 0, 1, 1], [], []>} : vector<8x256xf32>, vector<256x128xf32>, vector<8x128xf32> -> vector<8x128xf32>
    %c0_3 = arith.constant 0 : index
    %c0_4 = arith.constant 0 : index
    %3 = vector.load %arg3[%c0_3, %c0_4] : memref<8x128xf32, #tpu.memory_space<vmem>>, vector<8x128xf32>
    tpu.vector_store %arg3[%c0_3, %c0_4], %2 {strides = array<i32>} : memref<8x128xf32, #tpu.memory_space<vmem>>, vector<8x128xf32>,
    return
  }
  func.func @transform_0(%arg0: i32) -> (i32, i32) {
    %c0_i32 = arith.constant 0 : i32
    %c0_i32_0 = arith.constant 0 : i32
    return %arg0, %c0_i32 : i32, i32
  }
  func.func @transform_1(%arg0: i32) -> (i32, i32) {
    %c0_i32 = arith.constant 0 : i32
    %c0_i32_0 = arith.constant 0 : i32
    %c0_i32_1 = arith.constant 0 : i32
    return %c0_i32, %c0_i32_0 : i32, i32
  }
  func.func @transform_2(%arg0: i32) -> (i32, i32) {
    %c0_i32 = arith.constant 0 : i32
    %c0_i32_0 = arith.constant 0 : i32
    return %arg0, %c0_i32 : i32, i32
  }
}

</mosaic_0001>

<bundles_post_ra>
// kernel: spectral_pool2d.1
= control target key start
LH: loop header
LB: loop body
LE: loop exit
PB: predicated region body
PF: predicated region fallthrough
CT: control target
= control target key end

     0   :  { %7 = vsyncpa [#allocation3], 0  ;;  %s195_s9 = smov [#allocation2]   ;;  %s225_s0 = inlined_call_operand.vmem [shape: f32[8,256], index: 0, kind: input, shape index: {}]   ;;  %s226_s1 = inlined_call_operand.hbm [shape: f32[256,128], index: 1, kind: input, shape index: {}]   ;;  %s227_s2 = inlined_call_operand.vmem [shape: f32[8,128], index: 2, kind: output, shape index: {}]  }
   0x1   :  { %s15_s10 = sshll.u32 %s195_s9, 4  ;;  %s16_s10 = int_to_ptr.vmem [resolvable:$true] %s15_s10 }
   0x2   :  { %s181_s11 = scalar_lea.vmem %s16_s10, 4096  ;;  %p186_p1 = scmp.lt.s32.totalorder %s16_s10, %s16_s10 }
   0x3   :  { %p182_p0 = scmp.ne.s32.totalorder %s16_s10, %s181_s11  ;;  %p187_p2 = scmp.lt.s32.totalorder %s181_s11, %s181_s11 }
   0x5   :  { %p188_p3 = por %p187_p2, %p186_p1 }
   0x7   :  { %p189_p4 = pnand %p188_p3, %p182_p0 }
   0x9   :  { %192 = shalt.err (!%p189_p4)
}
   0xa   :  { %s196_s12 = smov 128   ;;  %s197_s13 = smov 8  }
   0xb   :  { %21 = dma.hbm_to_vmem [thread:$0]  %s226_s1, 4096, %s16_s10, [#allocation3], %s196_s12, %s196_s12, %s197_s13  }
   0xc   :  { %193 = dma.done.wait [#allocation3], 4096  }
   0xd   :  { %194 = vsyncadd [#allocation3], 4294963200  ;;  %v58_v0 = vld [vmem:[#allocation2 + $0xf8] sm:$0xff]  ;;  %v57_v2 = vld [vmem:[#allocation2 + $0xf0] sm:$0xff] }
   0xe   :  { %v42_v1 = vld [vmem:[#allocation2 + $0x78] sm:$0xff]  ;;  %135 = vmatprep.subr.mxu0 %v58_v0  ;;  %v41_v3 = vld [vmem:[#allocation2 + $0x70] sm:$0xff]  ;;  %v56_v4 = vld [vmem:[#allocation2 + $0xe8] sm:$0xff] }
   0xf   :  { %136 = vmatpush3.msra.mxu0 %v42_v1  ;;  %v40_v5 = vld [vmem:[#allocation2 + $0x68] sm:$0xff]  ;;  %v55_v6 = vld [vmem:[#allocation2 + $0xe0] sm:$0xff]  ;;  %v54_v8 = vld [vmem:[#allocation2 + $0xd8] sm:$0xff] }
  0x10   :  { %137 = vmatprep.subr.mxu0 %v57_v2  ;;  %v39_v7 = vld [vmem:[#allocation2 + $0x60] sm:$0xff]  ;;  %v38_v9 = vld [vmem:[#allocation2 + $0x58] sm:$0xff]  ;;  %v53_v10 = vld [vmem:[#allocation2 + $0xd0] sm:$0xff] }
  0x11   :  { %138 = vmatpush3.msra.mxu0 %v41_v3  ;;  %v37_v11 = vld [vmem:[#allocation2 + $0x50] sm:$0xff]  ;;  %v52_v12 = vld [vmem:[#allocation2 + $0xc8] sm:$0xff]  ;;  %v51_v15 = vld [vmem:[#allocation2 + $0xc0] sm:$0xff] }
  0x12   :  { %139 = vmatprep.subr.mxu0 %v56_v4  ;;  %v26_v13 = vld [vmem:[%s225_s0 + $0x8] sm:$0xff]  ;;  %v35_v16 = vld [vmem:[#allocation2 + $0x40] sm:$0xff]  ;;  %v50_v17 = vld [vmem:[#allocation2 + $0xb8] sm:$0xff] }
  0x13   :  { %140 = vmatpush3.msra.mxu0 %v40_v5  ;;  %v36_v14 = vld [vmem:[#allocation2 + $0x48] sm:$0xff]  ;;  %123 = vmatprep.mubr.f32.mxu0 %v26_v13  ;;  %v34_v18 = vld [vmem:[#allocation2 + $0x38] sm:$0xff]  ;;  %v49_v19 = vld [vmem:[#allocation2 + $0xb0] sm:$0xff] }
  0x14   :  { %141 = vmatprep.subr.mxu0 %v55_v6  ;;  %v33_v20 = vld [vmem:[#allocation2 + $0x30] sm:$0xff]  ;;  %v48_v21 = vld [vmem:[#allocation2 + $0xa8] sm:$0xff]  ;;  %v47_v23 = vld [vmem:[#allocation2 + $0xa0] sm:$0xff] }
  0x15   :  { %142 = vmatpush3.msra.mxu0 %v39_v7  ;;  %v32_v22 = vld [vmem:[#allocation2 + $0x28] sm:$0xff]  ;;  %v31_v24 = vld [vmem:[#allocation2 + $0x20] sm:$0xff]  ;;  %v46_v25 = vld [vmem:[#allocation2 + $0x98] sm:$0xff] }
  0x16   :  { %143 = vmatprep.subr.mxu0 %v54_v8  ;;  %v30_v26 = vld [vmem:[#allocation2 + $0x18] sm:$0xff]  ;;  %v45_v27 = vld [vmem:[#allocation2 + $0x90] sm:$0xff]  ;;  %v44_v29 = vld [vmem:[#allocation2 + $0x88] sm:$0xff] }
  0x17   :  { %144 = vmatpush3.msra.mxu0 %v38_v9  ;;  %v29_v28 = vld [vmem:[#allocation2 + $0x10] sm:$0xff]  ;;  %v28_v30 = vld [vmem:[#allocation2 + $0x8] sm:$0xff]  ;;  %v43_v31 = vld [vmem:[#allocation2 + $0x80] sm:$0xff] }
  0x18   :  { %145 = vmatprep.subr.mxu0 %v53_v10  ;;  %v27_v32 = vld [vmem:[#allocation2] sm:$0xff] }
  0x19   :  { %146 = vmatpush3.msra.mxu0 %v37_v11  ;;  %v25_v33 = vld [vmem:[%s225_s0] sm:$0xff] }
  0x1a   :  { %147 = vmatprep.subr.mxu0 %v52_v12 }
  0x1b   :  { %148 = vmatpush3.msra.mxu0 %v36_v14 }
  0x1c   :  { %149 = vmatprep.subr.mxu0 %v51_v15 }
  0x1d   :  { %150 = vmatpush3.msra.mxu0 %v35_v16 }
  0x1e   :  { %151 = vmatprep.subr.mxu0 %v50_v17 }
  0x1f   :  { %152 = vmatpush3.msra.mxu0 %v34_v18 }
  0x20   :  { %153 = vmatprep.subr.mxu0 %v49_v19 }
  0x21   :  { %154 = vmatpush3.msra.mxu0 %v33_v20 }
  0x22   :  { %155 = vmatprep.subr.mxu0 %v48_v21 }
  0x23   :  { %156 = vmatpush3.msra.mxu0 %v32_v22 }
  0x24   :  { %157 = vmatprep.subr.mxu0 %v47_v23 }
  0x25   :  { %158 = vmatpush3.msra.mxu0 %v31_v24 }
  0x26   :  { %159 = vmatprep.subr.mxu0 %v46_v25 }
  0x27   :  { %160 = vmatpush3.msra.mxu0 %v30_v26 }
  0x28   :  { %161 = vmatprep.subr.mxu0 %v45_v27 }
  0x29   :  { %162 = vmatpush3.msra.mxu0 %v29_v28 }
  0x2a   :  { %163 = vmatprep.subr.mxu0 %v44_v29 }
  0x2b   :  { %164 = vmatpush3.msra.mxu0 %v28_v30 }
  0x2c   :  { %165 = vmatprep.subr.mxu0 %v43_v31 }
  0x2d   :  { %166 = vmatpush3.msra.mxu0 %v27_v32 }
  0x2e   :  { %124 = vmatmul.mubr.f32.vlgmr.msra.gmra.mxu0 %v25_v33 }
  0xee   :  { %v167_v34 = vpop.f32.mrf.mxu0 }
  0xf0   :  { %v168_v35 = vpop.f32.mrf.mxu0 }
  0xf1   :  { %v169_v36 = vadd.f32 %v168_v35, %v167_v34 }
  0xf3   :  { %129 = vst [vmem:[%s227_s2] sm:$0xff] %v169_v36 }
  0xf4   :  { %134 = vsyncpa [#allocation3], 1 }

</bundles_post_ra>
